<compile_context>
chip_gen: v6e
topology: v6e:2x2x1
jax: 0.10.0
libtpu: 0.0.40
codegen_flags: <defaults>
</compile_context>

<pallas_src>
import functools

import jax
import jax.numpy as jnp
from jax.experimental import pallas as pl
from jax.experimental.pallas import tpu as pltpu

_EPS = 1e-5


# ---------------------------------------------------------------------------
# Kernel bodies
# ---------------------------------------------------------------------------
def _row_normalize(x_ref, w_ref, inv_d):
    """Two-pass LayerNorm over the last axis of a (tm, D) tile. Returns f32."""
    x = x_ref[...].astype(jnp.float32)                               # (tm, D)
    mean = jnp.sum(x, axis=-1, keepdims=True) * inv_d                # (tm, 1)
    centered = x - mean
    var = jnp.sum(centered * centered, axis=-1, keepdims=True) * inv_d
    inv = jax.lax.rsqrt(var + _EPS)                                  # (tm, 1)
    w32 = w_ref[...].astype(jnp.float32)                             # (1, D)
    return centered * (inv * w32)


def _row_kernel_bias(x_ref, w_ref, b_ref, o_ref, *, inv_d):
    y = _row_normalize(x_ref, w_ref, inv_d) + b_ref[...].astype(jnp.float32)
    o_ref[...] = y.astype(o_ref.dtype)


def _row_kernel_nobias(x_ref, w_ref, o_ref, *, inv_d):
    o_ref[...] = _row_normalize(x_ref, w_ref, inv_d).astype(o_ref.dtype)


def _folded_normalize(x_ref, w_ref, seg_ref, inv_d):
    """Lane-folded tile: each kernel row holds k logical rows of width D packed
    into k*D = 128 lanes. Segment sums are computed on the MXU with a
    block-diagonal ones matrix (the MXU is otherwise idle in this kernel)."""
    x = x_ref[...].astype(jnp.float32)                               # (tm, k*D)
    seg = seg_ref[...]                                               # (k*D, k*D)
    mean = jnp.dot(x, seg, preferred_element_type=jnp.float32,
                   precision=jax.lax.Precision.HIGHEST) * inv_d      # per-segment, broadcast
    centered = x - mean
    var = jnp.dot(centered * centered, seg, preferred_element_type=jnp.float32,
                  precision=jax.lax.Precision.HIGHEST) * inv_d
    inv = jax.lax.rsqrt(var + _EPS)
    w32 = w_ref[...].astype(jnp.float32)                             # (1, k*D), weight tiled k times
    return centered * (inv * w32)


def _folded_kernel_bias(x_ref, w_ref, b_ref, seg_ref, o_ref, *, inv_d):
    y = _folded_normalize(x_ref, w_ref, seg_ref, inv_d) + b_ref[...].astype(jnp.float32)
    o_ref[...] = y.astype(o_ref.dtype)


def _folded_kernel_nobias(x_ref, w_ref, seg_ref, o_ref, *, inv_d):
    o_ref[...] = _folded_normalize(x_ref, w_ref, seg_ref, inv_d).astype(o_ref.dtype)


# ---------------------------------------------------------------------------
# Tiling / VMEM heuristics
# ---------------------------------------------------------------------------
def _round_up(v, m):
    return -(-v // m) * m


def _tpu_vmem_capacity_bytes():
    try:
        info = pltpu.get_tpu_info()
        cap = getattr(info, "vmem_capacity_bytes", None)
        if cap:
            return int(cap)
    except Exception:
        pass
    return 64 * 1024 * 1024  # conservative (v7x per-TC)


def _generation_params():
    cap = _tpu_vmem_capacity_bytes()
    if cap >= 96 * 1024 * 1024:
        # v5e / v6e: 128 MiB physical VMEM, single TensorCore per chip.
        return {"budget": 100 << 20, "limit_cap": 110 << 20, "min_steps": 2}
    # v7x: 64 MiB per TensorCore; >=4 grid steps lets both TCs pipeline.
    return {"budget": 40 << 20, "limit_cap": 48 << 20, "min_steps": 4}


def _choose_tm(M, D, itemsize, budget, min_steps):
    """Largest row tile that fits the VMEM budget, with a minimum grid length."""
    sub = {4: 8, 2: 16, 1: 32}.get(itemsize, 8)  # sublane packing multiple
    if M <= sub:
        return M                                  # full-extent block is legal
    # Per-row VMEM: double-buffered in+out tiles at `itemsize` plus ~2 f32
    # compute intermediates (upcast + centered) per element.
    per_row = (4 * itemsize + 8) * D
    tm = min(max(sub, budget // per_row), 8192)
    # Guarantee >= min_steps grid steps when there is enough work, so the DMA
    # pipeline double-buffers and (v7x) both TensorCores get rows to chew on.
    if M > 2 * sub:
        tm = min(tm, _round_up(pl.cdiv(M, min_steps), sub))
    tm = max(sub, (tm // sub) * sub)
    if tm >= M:
        return M
    return tm


# ---------------------------------------------------------------------------
# Wrapper
# ---------------------------------------------------------------------------
def layer_norm(x, weight, bias=None, *, tm=None):
    """LayerNorm over the last dim of x (any leading dims). eps = 1e-5."""
    orig_shape = x.shape
    w_flat = weight.reshape(-1)
    D = w_flat.shape[0]
    x2 = x.reshape(-1, D)
    M = x2.shape[0]
    itemsize = jnp.dtype(x.dtype).itemsize
    gen = _generation_params()

    # Lane-fold narrow feature dims: view (M, D) as (M/k, k*D) with k*D == 128,
    # so stores are lane-dense (unmasked vst) and all 128 VPU lanes are used.
    fold = 1
    if D < 128 and 128 % D == 0:
        k = 128 // D
        if M % k == 0 and (M // k) >= 8:
            fold = k

    if fold > 1:
        d_eff = fold * D                                  # == 128
        m_eff = M // fold
        x_in = x2.reshape(m_eff, d_eff)
        w_in = jnp.tile(w_flat, fold).reshape(1, d_eff)
        b_in = (jnp.tile(bias.reshape(-1), fold).reshape(1, d_eff)
                if bias is not None else None)
        lane = jnp.arange(d_eff)
        seg = (lane[:, None] // D == lane[None, :] // D).astype(jnp.float32)
    else:
        m_eff, d_eff = M, D
        x_in = x2
        w_in = w_flat.reshape(1, D)
        b_in = bias.reshape(1, D) if bias is not None else None
        seg = None

    if tm is None:
        tm = _choose_tm(m_eff, d_eff, itemsize, gen["budget"], gen["min_steps"])
    grid = (pl.cdiv(m_eff, tm),)                          # no host-side pad / slice

    row_spec = pl.BlockSpec((tm, d_eff), lambda i: (i, 0))
    param_spec = pl.BlockSpec((1, d_eff), lambda i: (0, 0))
    inv_d = 1.0 / float(D)

    inputs = [x_in, w_in]
    in_specs = [row_spec, param_spec]
    if bias is not None:
        inputs.append(b_in)
        in_specs.append(param_spec)
    if fold > 1:
        inputs.append(seg)
        in_specs.append(pl.BlockSpec((d_eff, d_eff), lambda i: (0, 0)))
        kernel_fn = _folded_kernel_bias if bias is not None else _folded_kernel_nobias
    else:
        kernel_fn = _row_kernel_bias if bias is not None else _row_kernel_nobias
    kernel = functools.partial(kernel_fn, inv_d=inv_d)

    # VMEM accounting: in/out double-buffered + f32 intermediates + params/seg.
    vmem_need = (4 * tm * d_eff * itemsize               # in + out, double-buffered
                 + 2 * tm * d_eff * 4                    # f32 upcast + centered temps
                 + 16 * d_eff * 4                        # params
                 + (2 * d_eff * d_eff * 4 if fold > 1 else 0)
                 + (4 << 20))                            # compiler slack
    vmem_limit = int(min(gen["limit_cap"], max(32 << 20, vmem_need)))

    cost = pl.CostEstimate(
        flops=int(10 * M * D),
        transcendentals=int(M),
        bytes_accessed=int(2 * M * D * itemsize + 2 * D * itemsize),
    )

    out = pl.pallas_call(
        kernel,
        out_shape=jax.ShapeDtypeStruct((m_eff, d_eff), x.dtype),
        grid_spec=pltpu.PrefetchScalarGridSpec(
            num_scalar_prefetch=0,
            grid=grid,
            in_specs=in_specs,
            out_specs=row_spec,
        ),
        compiler_params=pltpu.CompilerParams(
            dimension_semantics=("parallel",),
            vmem_limit_bytes=vmem_limit,
        ),
        cost_estimate=cost,
    )(*inputs)

    return out.reshape(orig_shape)


# ---------------------------------------------------------------------------
# Self-test
# ---------------------------------------------------------------------------
if __name__ == "__main__":
    root = jax.random.PRNGKey(0)
    k0, k1, k2, k3 = jax.random.split(root, 4)

    def ref_ln(x, w, b):
        mean = jnp.mean(x, axis=-1, keepdims=True)
        var = jnp.mean((x - mean) ** 2, axis=-1, keepdims=True)
        y = (x - mean) / jnp.sqrt(var + _EPS) * w
        return y + b if b is not None else y

    # --- module-scale shape: batch=2, seq=8, hidden=32 (row-reduction path) ---
    batch, seq, hidden = 2, 8, 32
    x = jax.random.normal(k0, (batch, seq, hidden), dtype=jnp.float32)
    weight = jnp.ones((hidden,), dtype=jnp.float32)   # nn.Parameter(torch.ones(dims))
    bias = jnp.zeros((hidden,), dtype=jnp.float32)    # nn.Parameter(torch.zeros(dims))

    y = jax.block_until_ready(layer_norm(x, weight, bias))
    assert jnp.allclose(y, ref_ln(x, weight, bias), atol=1e-4, rtol=1e-4)

    y_nb = jax.block_until_ready(layer_norm(x, weight, None))
    assert jnp.allclose(y_nb, ref_ln(x, weight, None), atol=1e-4, rtol=1e-4)

    # --- enough rows to trigger the lane-folded path (D=32 -> k=4, M=128) ---
    seq2 = 64
    x2 = jax.random.normal(k1, (batch, seq2, hidden), dtype=jnp.float32)
    w2 = jax.random.normal(k2, (hidden,), dtype=jnp.float32)
    b2 = jax.random.normal(k3, (hidden,), dtype=jnp.float32)

    # Folded path reduces on the MXU; tolerance leaves room for bf16-pass
    # rounding on configurations that do not honor Precision.HIGHEST exactly.
    y2 = jax.block_until_ready(layer_norm(x2, w2, b2))
    assert jnp.allclose(y2, ref_ln(x2, w2, b2), atol=1e-3, rtol=1e-3)

    y2_nb = jax.block_until_ready(layer_norm(x2, w2, None))
    assert jnp.allclose(y2_nb, ref_ln(x2, w2, None), atol=1e-3, rtol=1e-3)

    print("KERNEL_OK")
</pallas_src>

<mosaic_0001>
module attributes {stable_mosaic.version = 11 : i64} {
  func.func @_row_kernel_bias(%arg0: i32, %arg1: memref<16x32xf32, #tpu.memory_space<vmem>>, %arg2: memref<1x32xf32, #tpu.memory_space<vmem>>, %arg3: memref<1x32xf32, #tpu.memory_space<vmem>>, %arg4: memref<16x32xf32, #tpu.memory_space<vmem>>) attributes {dimension_semantics = [#tpu.dimension_semantics<parallel>], iteration_bounds = array<i64: 1>, scalar_prefetch = 0 : i64, scratch_operands = 0 : i64, tpu.core_type = #tpu.core_type<tc>, window_params = [{transform_indices = @transform_0, window_bounds = array<i64: 16, 32>}, {pipeline_mode = #tpu.pipeline_mode<synchronous>, transform_indices = @transform_1, window_bounds = array<i64: 1, 32>}, {pipeline_mode = #tpu.pipeline_mode<synchronous>, transform_indices = @transform_2, window_bounds = array<i64: 1, 32>}, {transform_indices = @transform_3, window_bounds = array<i64: 16, 32>}]} {
    %c0 = arith.constant 0 : index
    %c0_0 = arith.constant 0 : index
    %0 = vector.load %arg1[%c0, %c0_0] : memref<16x32xf32, #tpu.memory_space<vmem>>, vector<16x32xf32>
    %cst = arith.constant dense<0.000000e+00> : vector<16xf32>
    %1 = vector.multi_reduction <add>, %0, %cst [1] : vector<16x32xf32> to vector<16xf32>
    %2 = vector.shape_cast %1 : vector<16xf32> to vector<16x1xf32>
    %cst_1 = arith.constant 3.125000e-02 : f32
    %3 = vector.broadcast %cst_1 : f32 to vector<16x1xf32>
    %4 = arith.mulf %2, %3 : vector<16x1xf32>
    %5 = vector.broadcast %4 : vector<16x1xf32> to vector<16x32xf32>
    %6 = arith.subf %0, %5 : vector<16x32xf32>
    %7 = arith.mulf %6, %6 : vector<16x32xf32>
    %cst_2 = arith.constant dense<0.000000e+00> : vector<16xf32>
    %8 = vector.multi_reduction <add>, %7, %cst_2 [1] : vector<16x32xf32> to vector<16xf32>
    %9 = vector.shape_cast %8 : vector<16xf32> to vector<16x1xf32>
    %cst_3 = arith.constant 3.125000e-02 : f32
    %10 = vector.broadcast %cst_3 : f32 to vector<16x1xf32>
    %11 = arith.mulf %9, %10 : vector<16x1xf32>
    %cst_4 = arith.constant 9.99999974E-6 : f32
    %12 = vector.broadcast %cst_4 : f32 to vector<16x1xf32>
    %13 = arith.addf %11, %12 : vector<16x1xf32>
    %14 = math.rsqrt %13 : vector<16x1xf32>
    %c0_5 = arith.constant 0 : index
    %c0_6 = arith.constant 0 : index
    %15 = vector.load %arg2[%c0_5, %c0_6] : memref<1x32xf32, #tpu.memory_space<vmem>>, vector<1x32xf32>
    %16 = vector.broadcast %14 : vector<16x1xf32> to vector<16x32xf32>
    %17 = vector.broadcast %15 : vector<1x32xf32> to vector<16x32xf32>
    %18 = arith.mulf %16, %17 : vector<16x32xf32>
    %19 = arith.mulf %6, %18 : vector<16x32xf32>
    %c0_7 = arith.constant 0 : index
    %c0_8 = arith.constant 0 : index
    %20 = vector.load %arg3[%c0_7, %c0_8] : memref<1x32xf32, #tpu.memory_space<vmem>>, vector<1x32xf32>
    %21 = vector.broadcast %20 : vector<1x32xf32> to vector<16x32xf32>
    %22 = arith.addf %19, %21 : vector<16x32xf32>
    %c0_9 = arith.constant 0 : index
    %c0_10 = arith.constant 0 : index
    %23 = vector.load %arg4[%c0_9, %c0_10] : memref<16x32xf32, #tpu.memory_space<vmem>>, vector<16x32xf32>
    tpu.vector_store %arg4[%c0_9, %c0_10], %22 {strides = array<i32>} : memref<16x32xf32, #tpu.memory_space<vmem>>, vector<16x32xf32>,
    return
  }
  func.func @transform_0(%arg0: i32) -> (i32, i32) {
    %c0_i32 = arith.constant 0 : i32
    %c0_i32_0 = arith.constant 0 : i32
    return %arg0, %c0_i32 : i32, i32
  }
  func.func @transform_1(%arg0: i32) -> (i32, i32) {
    %c0_i32 = arith.constant 0 : i32
    %c0_i32_0 = arith.constant 0 : i32
    %c0_i32_1 = arith.constant 0 : i32
    return %c0_i32, %c0_i32_0 : i32, i32
  }
  func.func @transform_2(%arg0: i32) -> (i32, i32) {
    %c0_i32 = arith.constant 0 : i32
    %c0_i32_0 = arith.constant 0 : i32
    %c0_i32_1 = arith.constant 0 : i32
    return %c0_i32, %c0_i32_0 : i32, i32
  }
  func.func @transform_3(%arg0: i32) -> (i32, i32) {
    %c0_i32 = arith.constant 0 : i32
    %c0_i32_0 = arith.constant 0 : i32
    return %arg0, %c0_i32 : i32, i32
  }
}

</mosaic_0001>

<bundles_post_ra>
// kernel: tpu_custom_call.1
= control target key start
LH: loop header
LB: loop body
LE: loop exit
PB: predicated region body
PF: predicated region fallthrough
CT: control target
= control target key end

     0   :  { %8 = vsyncpa [#allocation3], 0  ;;  %s197_s0 = inlined_call_operand.hbm [shape: f32[16,32], index: 0, kind: input, shape index: {}]   ;;  %s198_s1 = inlined_call_operand.vmem [shape: f32[1,32], index: 1, kind: input, shape index: {}]   ;;  %s199_s2 = inlined_call_operand.vmem [shape: f32[1,32], index: 2, kind: input, shape index: {}]   ;;  %s200_s3 = inlined_call_operand.hbm [shape: f32[16,32], index: 3, kind: output, shape index: {}]  }
   0x1   :  { %9 = vsyncpa [#allocation4], 0  ;;  %s149_s12 = smov [#allocation2]  }
   0x2   :  { %s15_s13 = sshll.u32 %s149_s12, 4  ;;  %s16_s13 = int_to_ptr.vmem [resolvable:$true] %s15_s13 }
   0x3   :  { %s113_s14 = scalar_lea.vmem %s16_s13, 256  ;;  %p118_p1 = scmp.lt.s32.totalorder %s16_s13, %s16_s13 }
   0x4   :  { %p114_p0 = scmp.ne.s32.totalorder %s16_s13, %s113_s14  ;;  %p119_p2 = scmp.lt.s32.totalorder %s113_s14, %s113_s14 }
   0x6   :  { %p120_p3 = por %p119_p2, %p118_p1 }
   0x8   :  { %p121_p4 = pnand %p120_p3, %p114_p0 }
   0xa   :  { %124 = shalt.err (!%p121_p4)
}
   0xb   :  { %s150_s15 = smov 128   ;;  %s151_s16 = smov 8  }
   0xc   :  { %21 = dma.hbm_to_vmem [thread:$0]  %s197_s0, 256, %s16_s13, [#allocation3], %s150_s15, %s150_s15, %s151_s16  }
   0xd   :  { %145 = dma.done.wait [#allocation3], 256  }
   0xe   :  { %146 = vsyncadd [#allocation3], 4294967040  ;;  %vm31_vm0 = vcmask 261120   ;;  %v29_v0 = vld [vmem:[#allocation2] sm:$0xff]  ;;  %v30_v1 = vld [vmem:[#allocation2 + $0x8] sm:$0xff]  ;;  %s152_s22 = smov [#allocation5]  }
   0xf   :  { %v32_v2 = vsel %vm31_vm0, %v29_v0, 0.0  ;;  %v35_v3 = vsel %vm31_vm0, %v30_v1, 0.0  ;;  %v95_v20 = vld [vmem:[%s198_s1] ss:$0 sm:$0xff]  ;;  %s83_s23 = sshll.u32 %s152_s22, 4  ;;  %s84_s23 = int_to_ptr.vmem [resolvable:$true] %s83_s23 }
  0x10   :  { %33 = vadd.xlane.f32.xlu0 %v32_v2  ;;  %v96_v23 = vld [vmem:[%s199_s2] ss:$0 sm:$0xff]  ;;  %s125_s1 = scalar_lea.vmem %s84_s23, 256  ;;  %p130_p6 = scmp.lt.s32.totalorder %s84_s23, %s84_s23 }
  0x11   :  { %p126_p5 = scmp.ne.s32.totalorder %s84_s23, %s125_s1  ;;  %p131_p7 = scmp.lt.s32.totalorder %s125_s1, %s125_s1 }
  0x13   :  { %p132_p8 = por %p131_p7, %p130_p6 }
  0x14   :  { %36 = vadd.xlane.f32.xlu0 %v35_v3 }
  0x15   :  { %p133_p9 = pnand %p132_p8, %p126_p5 }
  0x99   :  { %v34_v4 = vpop.xlane.xlu0 %33 }
  0x9a   :  { %v38_v5 = vmul.f32 0.03125, %v34_v4 }
  0x9c   :  { %v40_v6 = vsub.f32 %v29_v0, %v38_v5 }
  0x9d   :  { %v37_v7 = vpop.xlane.xlu0 %36 }
  0x9e   :  { %v39_v8 = vmul.f32 0.03125, %v37_v7  ;;  %v42_v9 = vmul.f32 %v40_v6, %v40_v6 }
  0xa0   :  { %v41_v10 = vsub.f32 %v30_v1, %v39_v8  ;;  %v44_v11 = vsel %vm31_vm0, %v42_v9, 0.0 }
  0xa1   :  { %45 = vadd.xlane.f32.xlu1 %v44_v11 }
  0xa2   :  { %v43_v12 = vmul.f32 %v41_v10, %v41_v10 }
  0xa4   :  { %v47_v13 = vsel %vm31_vm0, %v43_v12, 0.0 }
  0xa5   :  { %48 = vadd.xlane.f32.xlu1 %v47_v13 }
 0x12a   :  { %v46_v14 = vpop.xlane.xlu1 %45 }
 0x12b   :  { %v50_v15 = vmul.f32 0.03125, %v46_v14 }
 0x12d   :  { %v52_v16 = vadd.f32 1e-05, %v50_v15 }
 0x12e   :  { %v49_v17 = vpop.xlane.xlu1 %48 }
 0x12f   :  { %101 = vrsqrt.f32 %v52_v16  ;;  %v51_v18 = vmul.f32 0.03125, %v49_v17 }
 0x131   :  { %v53_v19 = vadd.f32 1e-05, %v51_v18 }
 0x133   :  { %103 = vrsqrt.f32 %v53_v19 }
 0x13c   :  { %v102_v21 = vpop.eup %101 }
 0x13d   :  { %v63_v22 = vmul.f32 %v102_v21, %v95_v20 }
 0x13f   :  { %v65_v24 = vmul.f32 %v63_v22, %v40_v6 }
 0x140   :  { %v104_v25 = vpop.eup %103 }
 0x141   :  { %v64_v26 = vmul.f32 %v104_v25, %v95_v20  ;;  %v74_v27 = vadd.f32 %v96_v23, %v65_v24 }
 0x143   :  { %v66_v28 = vmul.f32 %v64_v26, %v41_v10  ;;  %76 = vst.msk [vmem:[#allocation5] sm:$0xff] %vm31_vm0, %v74_v27 }
 0x145   :  { %v75_v29 = vadd.f32 %v96_v23, %v66_v28 }
 0x147   :  { %77 = vst.msk [vmem:[#allocation5 + $0x8] sm:$0xff] %vm31_vm0, %v75_v29 }
 0x148   :  { %136 = shalt.err (!%p133_p9)
}
 0x149   :  { %89 = dma.vmem_to_hbm [thread:$0]  %s84_s23, 256, %s200_s3, [#allocation4], %s150_s15, %s150_s15, %s151_s16  }
 0x14a   :  { %147 = dma.done.wait [#allocation4], 256  }
 0x14b   :  { %148 = vsyncadd [#allocation4], 4294967040 }
 0x14c   :  { %93 = vsyncpa [#allocation3], 1 }
 0x14d   :  { %94 = vsyncpa [#allocation4], 1 }

</bundles_post_ra>
